<compile_context>
chip_gen: v6e
topology: v6e:2x2x1
jax: 0.10.0
libtpu: 0.0.40
codegen_flags: <defaults>
</compile_context>

<pallas_src>
import jax
import jax.numpy as jnp
from jax.experimental import pallas as pl
from jax.experimental.pallas import tpu as pltpu

HIDDEN = 100
LEAKY_SLOPE = 0.2
_LANE = 128
_SUBLANE = 8


def _round_up(n, m):
    return ((n + m - 1) // m) * m


def _pad_to(a, shape):
    pads = [(0, t - s) for s, t in zip(a.shape, shape)]
    if all(p == (0, 0) for p in pads):
        return a
    return jnp.pad(a, pads)


def _leaky_relu(h):
    # slope 0.2 > 0  =>  leaky_relu(h) == max(h, 0.2*h)  (exact)
    return jnp.maximum(h, LEAKY_SLOPE * h)


def _mlp_kernel(x_ref, w1_ref, b1_ref, w2_ref, b2_ref, w3_ref, b3_ref, o_ref):
    # Layer 1: Linear + LeakyReLU(0.2)   (Dropout = identity in eval mode)
    h = jnp.dot(x_ref[...], w1_ref[...], preferred_element_type=jnp.float32)
    h = _leaky_relu(h + b1_ref[...])

    # Layer 2: Linear + LeakyReLU(0.2)   (Dropout = identity in eval mode)
    h = jnp.dot(h.astype(w2_ref.dtype), w2_ref[...],
                preferred_element_type=jnp.float32)
    h = _leaky_relu(h + b2_ref[...])

    # Layer 3: Linear
    out = jnp.dot(h.astype(w3_ref.dtype), w3_ref[...],
                  preferred_element_type=jnp.float32)
    out = out + b3_ref[...]
    o_ref[...] = out.astype(o_ref.dtype)


def net_forward(x, params, *, batch_tile=None, max_single_tile=1024,
                compute_dtype=jnp.float32):
    """Forward pass of Net as one fused Pallas kernel.

    The wrapper pads every feature dim to a multiple of 128 (zero pads, math
    unchanged) and auto-sizes the batch tile; results are sliced back to the
    caller's shapes.  `compute_dtype=jnp.bfloat16` can be used on v6e/v7x for
    MXU throughput (accumulation stays f32).
    """
    w1, b1, w2, b2, w3, b3 = params
    B, input_dim = x.shape
    output_dim = w3.shape[1]

    # --- padded feature dims (lane-dense everywhere) ---
    d_pad = _round_up(input_dim, _LANE)
    h_pad = _round_up(HIDDEN, _LANE)          # 100 -> 128
    o_pad = _round_up(output_dim, _LANE)

    # --- batch tiling: whole batch in one step when small, 1024-row tiles else ---
    b_aligned = _round_up(B, _SUBLANE)
    if batch_tile is None:
        batch_tile = b_aligned if b_aligned <= max_single_tile else max_single_tile
    batch_tile = _round_up(batch_tile, _SUBLANE)
    b_total = _round_up(B, batch_tile)
    grid = (b_total // batch_tile,)

    # --- zero-pad operands (exact math: padded rows/cols contribute 0) ---
    xp = _pad_to(x, (b_total, d_pad)).astype(compute_dtype)
    w1p = _pad_to(w1, (d_pad, h_pad)).astype(compute_dtype)
    b1p = _pad_to(b1, (1, h_pad)).astype(jnp.float32)
    w2p = _pad_to(w2, (h_pad, h_pad)).astype(compute_dtype)
    b2p = _pad_to(b2, (1, h_pad)).astype(jnp.float32)
    w3p = _pad_to(w3, (h_pad, o_pad)).astype(compute_dtype)
    b3p = _pad_to(b3, (1, o_pad)).astype(jnp.float32)

    # Weights/biases use a constant index_map (fetched once, resident in VMEM);
    # x / out stream over the (parallel) batch axis.
    in_specs = [
        pl.BlockSpec((batch_tile, d_pad), lambda i: (i, 0)),
        pl.BlockSpec((d_pad, h_pad), lambda i: (0, 0)),
        pl.BlockSpec((1, h_pad), lambda i: (0, 0)),
        pl.BlockSpec((h_pad, h_pad), lambda i: (0, 0)),
        pl.BlockSpec((1, h_pad), lambda i: (0, 0)),
        pl.BlockSpec((h_pad, o_pad), lambda i: (0, 0)),
        pl.BlockSpec((1, o_pad), lambda i: (0, 0)),
    ]
    out_specs = pl.BlockSpec((batch_tile, o_pad), lambda i: (i, 0))

    out_padded = pl.pallas_call(
        _mlp_kernel,
        out_shape=jax.ShapeDtypeStruct((b_total, o_pad), jnp.float32),
        grid_spec=pl.GridSpec(
            grid=grid,
            in_specs=in_specs,
            out_specs=out_specs,
        ),
        compiler_params=pltpu.CompilerParams(
            dimension_semantics=("parallel",),
        ),
    )(xp, w1p, b1p, w2p, b2p, w3p, b3p)

    # Slice off batch/feature padding (cheap XLA-side slice, lane-dense store
    # stays inside the kernel).
    return out_padded[:B, :output_dim]


def init_params(key, input_dim, output_dim):
    """Deterministic init mimicking nn.Linear's uniform(-1/sqrt(fan_in), 1/sqrt(fan_in))."""
    ks = jax.random.split(key, 6)

    def lin(kw, kb, fan_in, fan_out):
        bound = 1.0 / jnp.sqrt(fan_in)
        w = jax.random.uniform(kw, (fan_in, fan_out), jnp.float32, -bound, bound)
        b = jax.random.uniform(kb, (1, fan_out), jnp.float32, -bound, bound)
        return w, b

    w1, b1 = lin(ks[0], ks[1], input_dim, HIDDEN)
    w2, b2 = lin(ks[2], ks[3], HIDDEN, HIDDEN)
    w3, b3 = lin(ks[4], ks[5], HIDDEN, output_dim)
    return (w1, b1, w2, b2, w3, b3)


def net_forward_ref(x, params):
    """Pure-JAX reference for correctness check (eval-mode forward)."""
    w1, b1, w2, b2, w3, b3 = params
    h = x @ w1 + b1
    h = jnp.where(h >= 0, h, LEAKY_SLOPE * h)
    h = h @ w2 + b2
    h = jnp.where(h >= 0, h, LEAKY_SLOPE * h)
    return h @ w3 + b3


if __name__ == "__main__":
    key = jax.random.PRNGKey(0)
    k_param, k_x = jax.random.split(key)

    batch = 16
    input_dim = 32   # e.g. joint-sample dimension for CODINE Gaussian
    output_dim = 8

    params = init_params(k_param, input_dim, output_dim)
    x = jax.random.normal(k_x, (batch, input_dim), jnp.float32)

    # Small batch -> single grid step, everything padded to 128-wide lanes.
    y = net_forward(x, params)
    y = jax.block_until_ready(y)

    y_ref = net_forward_ref(x, params)
    assert y.shape == (batch, output_dim)
    assert jnp.allclose(y, y_ref, atol=1e-4, rtol=1e-4), "mismatch vs reference"

    # Also exercise the multi-tile (grid > 1) path once for coverage.
    x_big = jax.random.normal(k_x, (2048 + 13, input_dim), jnp.float32)
    y_big = jax.block_until_ready(net_forward(x_big, params))
    y_big_ref = net_forward_ref(x_big, params)
    assert jnp.allclose(y_big, y_big_ref, atol=1e-4, rtol=1e-4), "mismatch (big batch)"

    # TODO(synk): training-mode Dropout(0.1) (mask + 1/0.9 scaling) would need
    # pltpu.prng_seed / pltpu.prng_random_bits; eval-mode forward is identity.

    print("KERNEL_OK")
</pallas_src>

<mosaic_0001>
module attributes {stable_mosaic.version = 11 : i64} {
  func.func @_mlp_kernel(%arg0: i32, %arg1: memref<16x128xf32, #tpu.memory_space<vmem>>, %arg2: memref<128x128xf32, #tpu.memory_space<vmem>>, %arg3: memref<1x128xf32, #tpu.memory_space<vmem>>, %arg4: memref<128x128xf32, #tpu.memory_space<vmem>>, %arg5: memref<1x128xf32, #tpu.memory_space<vmem>>, %arg6: memref<128x128xf32, #tpu.memory_space<vmem>>, %arg7: memref<1x128xf32, #tpu.memory_space<vmem>>, %arg8: memref<16x128xf32, #tpu.memory_space<vmem>>) attributes {dimension_semantics = [#tpu.dimension_semantics<parallel>], iteration_bounds = array<i64: 1>, scalar_prefetch = 0 : i64, scratch_operands = 0 : i64, tpu.core_type = #tpu.core_type<tc>, window_params = [{transform_indices = @transform_0, window_bounds = array<i64: 16, 128>}, {pipeline_mode = #tpu.pipeline_mode<synchronous>, transform_indices = @transform_1, window_bounds = array<i64: 128, 128>}, {pipeline_mode = #tpu.pipeline_mode<synchronous>, transform_indices = @transform_2, window_bounds = array<i64: 1, 128>}, {pipeline_mode = #tpu.pipeline_mode<synchronous>, transform_indices = @transform_3, window_bounds = array<i64: 128, 128>}, {pipeline_mode = #tpu.pipeline_mode<synchronous>, transform_indices = @transform_4, window_bounds = array<i64: 1, 128>}, {pipeline_mode = #tpu.pipeline_mode<synchronous>, transform_indices = @transform_5, window_bounds = array<i64: 128, 128>}, {pipeline_mode = #tpu.pipeline_mode<synchronous>, transform_indices = @transform_6, window_bounds = array<i64: 1, 128>}, {transform_indices = @transform_7, window_bounds = array<i64: 16, 128>}]} {
    %c0 = arith.constant 0 : index
    %c0_0 = arith.constant 0 : index
    %0 = vector.load %arg1[%c0, %c0_0] : memref<16x128xf32, #tpu.memory_space<vmem>>, vector<16x128xf32>
    %c0_1 = arith.constant 0 : index
    %c0_2 = arith.constant 0 : index
    %1 = vector.load %arg2[%c0_1, %c0_2] : memref<128x128xf32, #tpu.memory_space<vmem>>, vector<128x128xf32>
    %cst = arith.constant dense<0.000000e+00> : vector<16x128xf32>
    %2 = tpu.matmul %0, %1, %cst {dimension_numbers = #tpu.dot_dimension_numbers<[1], [0], [0], [1], [0, 0, 1, 1], [], []>} : vector<16x128xf32>, vector<128x128xf32>, vector<16x128xf32> -> vector<16x128xf32>
    %c0_3 = arith.constant 0 : index
    %c0_4 = arith.constant 0 : index
    %3 = vector.load %arg3[%c0_3, %c0_4] : memref<1x128xf32, #tpu.memory_space<vmem>>, vector<1x128xf32>
    %4 = vector.broadcast %3 : vector<1x128xf32> to vector<16x128xf32>
    %5 = arith.addf %2, %4 : vector<16x128xf32>
    %cst_5 = arith.constant 2.000000e-01 : f32
    %6 = vector.broadcast %cst_5 : f32 to vector<16x128xf32>
    %7 = arith.mulf %6, %5 : vector<16x128xf32>
    %8 = arith.maximumf %5, %7 : vector<16x128xf32>
    %c0_6 = arith.constant 0 : index
    %c0_7 = arith.constant 0 : index
    %9 = vector.load %arg4[%c0_6, %c0_7] : memref<128x128xf32, #tpu.memory_space<vmem>>, vector<128x128xf32>
    %cst_8 = arith.constant dense<0.000000e+00> : vector<16x128xf32>
    %10 = tpu.matmul %8, %9, %cst_8 {dimension_numbers = #tpu.dot_dimension_numbers<[1], [0], [0], [1], [0, 0, 1, 1], [], []>} : vector<16x128xf32>, vector<128x128xf32>, vector<16x128xf32> -> vector<16x128xf32>
    %c0_9 = arith.constant 0 : index
    %c0_10 = arith.constant 0 : index
    %11 = vector.load %arg5[%c0_9, %c0_10] : memref<1x128xf32, #tpu.memory_space<vmem>>, vector<1x128xf32>
    %12 = vector.broadcast %11 : vector<1x128xf32> to vector<16x128xf32>
    %13 = arith.addf %10, %12 : vector<16x128xf32>
    %cst_11 = arith.constant 2.000000e-01 : f32
    %14 = vector.broadcast %cst_11 : f32 to vector<16x128xf32>
    %15 = arith.mulf %14, %13 : vector<16x128xf32>
    %16 = arith.maximumf %13, %15 : vector<16x128xf32>
    %c0_12 = arith.constant 0 : index
    %c0_13 = arith.constant 0 : index
    %17 = vector.load %arg6[%c0_12, %c0_13] : memref<128x128xf32, #tpu.memory_space<vmem>>, vector<128x128xf32>
    %cst_14 = arith.constant dense<0.000000e+00> : vector<16x128xf32>
    %18 = tpu.matmul %16, %17, %cst_14 {dimension_numbers = #tpu.dot_dimension_numbers<[1], [0], [0], [1], [0, 0, 1, 1], [], []>} : vector<16x128xf32>, vector<128x128xf32>, vector<16x128xf32> -> vector<16x128xf32>
    %c0_15 = arith.constant 0 : index
    %c0_16 = arith.constant 0 : index
    %19 = vector.load %arg7[%c0_15, %c0_16] : memref<1x128xf32, #tpu.memory_space<vmem>>, vector<1x128xf32>
    %20 = vector.broadcast %19 : vector<1x128xf32> to vector<16x128xf32>
    %21 = arith.addf %18, %20 : vector<16x128xf32>
    %c0_17 = arith.constant 0 : index
    %c0_18 = arith.constant 0 : index
    %22 = vector.load %arg8[%c0_17, %c0_18] : memref<16x128xf32, #tpu.memory_space<vmem>>, vector<16x128xf32>
    tpu.vector_store %arg8[%c0_17, %c0_18], %21 {strides = array<i32>} : memref<16x128xf32, #tpu.memory_space<vmem>>, vector<16x128xf32>,
    return
  }
  func.func @transform_0(%arg0: i32) -> (i32, i32) {
    %c0_i32 = arith.constant 0 : i32
    %c0_i32_0 = arith.constant 0 : i32
    return %arg0, %c0_i32 : i32, i32
  }
  func.func @transform_1(%arg0: i32) -> (i32, i32) {
    %c0_i32 = arith.constant 0 : i32
    %c0_i32_0 = arith.constant 0 : i32
    %c0_i32_1 = arith.constant 0 : i32
    return %c0_i32, %c0_i32_0 : i32, i32
  }
  func.func @transform_2(%arg0: i32) -> (i32, i32) {
    %c0_i32 = arith.constant 0 : i32
    %c0_i32_0 = arith.constant 0 : i32
    %c0_i32_1 = arith.constant 0 : i32
    return %c0_i32, %c0_i32_0 : i32, i32
  }
  func.func @transform_3(%arg0: i32) -> (i32, i32) {
    %c0_i32 = arith.constant 0 : i32
    %c0_i32_0 = arith.constant 0 : i32
    %c0_i32_1 = arith.constant 0 : i32
    return %c0_i32, %c0_i32_0 : i32, i32
  }
  func.func @transform_4(%arg0: i32) -> (i32, i32) {
    %c0_i32 = arith.constant 0 : i32
    %c0_i32_0 = arith.constant 0 : i32
    %c0_i32_1 = arith.constant 0 : i32
    return %c0_i32, %c0_i32_0 : i32, i32
  }
  func.func @transform_5(%arg0: i32) -> (i32, i32) {
    %c0_i32 = arith.constant 0 : i32
    %c0_i32_0 = arith.constant 0 : i32
    %c0_i32_1 = arith.constant 0 : i32
    return %c0_i32, %c0_i32_0 : i32, i32
  }
  func.func @transform_6(%arg0: i32) -> (i32, i32) {
    %c0_i32 = arith.constant 0 : i32
    %c0_i32_0 = arith.constant 0 : i32
    %c0_i32_1 = arith.constant 0 : i32
    return %c0_i32, %c0_i32_0 : i32, i32
  }
  func.func @transform_7(%arg0: i32) -> (i32, i32) {
    %c0_i32 = arith.constant 0 : i32
    %c0_i32_0 = arith.constant 0 : i32
    return %arg0, %c0_i32 : i32, i32
  }
}

</mosaic_0001>

<bundles_post_ra>
// kernel: tpu_custom_call.1
= control target key start
LH: loop header
LB: loop body
LE: loop exit
PB: predicated region body
PF: predicated region fallthrough
CT: control target
= control target key end

     0   :  { %12 = vsyncpa [#allocation3], 0  ;;  %s770_s0 = inlined_call_operand.hbm [shape: f32[16,128], index: 0, kind: input, shape index: {}]   ;;  %s771_s1 = inlined_call_operand.hbm [shape: f32[128,128], index: 1, kind: input, shape index: {}]   ;;  %s772_s2 = inlined_call_operand.vmem [shape: f32[1,128], index: 2, kind: input, shape index: {}]   ;;  %s773_s3 = inlined_call_operand.hbm [shape: f32[128,128], index: 3, kind: input, shape index: {}]   ;;  %s774_s4 = inlined_call_operand.vmem [shape: f32[1,128], index: 4, kind: input, shape index: {}]   ;;  %s775_s5 = inlined_call_operand.hbm [shape: f32[128,128], index: 5, kind: input, shape index: {}]   ;;  %s776_s6 = inlined_call_operand.vmem [shape: f32[1,128], index: 6, kind: input, shape index: {}]   ;;  %s777_s7 = inlined_call_operand.hbm [shape: f32[16,128], index: 7, kind: output, shape index: {}]  }
   0x1   :  { %13 = vsyncpa [#allocation6], 0 }
   0x2   :  { %14 = vsyncpa [#allocation9], 0 }
   0x3   :  { %15 = vsyncpa [#allocation4], 0  ;;  %s684_s24 = smov [#allocation5]   ;;  %s685_s26 = smov [#allocation2]  }
   0x4   :  { %s33_s25 = sshll.u32 %s684_s24, 4  ;;  %s21_s27 = sshll.u32 %s685_s26, 4  ;;  %s34_s25 = int_to_ptr.vmem [resolvable:$true] %s33_s25  ;;  %s22_s27 = int_to_ptr.vmem [resolvable:$true] %s21_s27 }
   0x5   :  { %s584_s28 = scalar_lea.vmem %s34_s25, 2048  ;;  %p589_p1 = scmp.lt.s32.totalorder %s34_s25, %s34_s25 }
   0x6   :  { %p585_p0 = scmp.ne.s32.totalorder %s34_s25, %s584_s28  ;;  %p590_p2 = scmp.lt.s32.totalorder %s584_s28, %s584_s28 }
   0x8   :  { %p591_p3 = por %p590_p2, %p589_p1 }
   0xa   :  { %p592_p4 = pnand %p591_p3, %p585_p0 }
   0xc   :  { %595 = shalt.err (!%p592_p4)
}
   0xd   :  { %s686_s29 = smov 128   ;;  %s687_s30 = smov 8  }
   0xe   :  { %39 = dma.hbm_to_vmem [thread:$0]  %s771_s1, 2048, %s34_s25, [#allocation6], %s686_s29, %s686_s29, %s687_s30  }
   0xf   :  { %s604_s10 = scalar_lea.vmem %s22_s27, 256  ;;  %p609_p6 = scmp.lt.s32.totalorder %s22_s27, %s22_s27 }
  0x10   :  { %p605_p5 = scmp.ne.s32.totalorder %s22_s27, %s604_s10  ;;  %p610_p7 = scmp.lt.s32.totalorder %s604_s10, %s604_s10 }
  0x12   :  { %p611_p8 = por %p610_p7, %p609_p6 }
  0x14   :  { %p612_p9 = pnand %p611_p8, %p605_p5 }
  0x16   :  { %615 = shalt.err (!%p612_p9)
}
  0x17   :  { %27 = dma.hbm_to_vmem [thread:$0]  %s770_s0, 256, %s22_s27, [#allocation3], %s686_s29, %s686_s29, %s687_s30  }
  0x18   :  { %s688_s13 = smov [#allocation7]   ;;  %s689_s15 = smov [#allocation8]  }
  0x19   :  { %s47_s14 = sshll.u32 %s688_s13, 4  ;;  %s61_s16 = sshll.u32 %s689_s15, 4  ;;  %s48_s14 = int_to_ptr.vmem [resolvable:$true] %s47_s14  ;;  %s62_s16 = int_to_ptr.vmem [resolvable:$true] %s61_s16 }
  0x1a   :  { %s624_s1 = scalar_lea.vmem %s48_s14, 2048  ;;  %p629_p11 = scmp.lt.s32.totalorder %s48_s14, %s48_s14 }
  0x1b   :  { %p625_p10 = scmp.ne.s32.totalorder %s48_s14, %s624_s1  ;;  %p630_p12 = scmp.lt.s32.totalorder %s624_s1, %s624_s1 }
  0x1d   :  { %p631_p13 = por %p630_p12, %p629_p11 }
  0x1f   :  { %p632_p0 = pnand %p631_p13, %p625_p10 }
  0x21   :  { %635 = shalt.err (!%p632_p0)
}
  0x22   :  { %53 = dma.hbm_to_vmem [thread:$0]  %s773_s3, 2048, %s48_s14, [#allocation6], %s686_s29, %s686_s29, %s687_s30  }
  0x23   :  { %s644_s0 = scalar_lea.vmem %s62_s16, 2048  ;;  %p649_p2 = scmp.lt.s32.totalorder %s62_s16, %s62_s16 }
  0x24   :  { %p645_p1 = scmp.ne.s32.totalorder %s62_s16, %s644_s0  ;;  %p650_p3 = scmp.lt.s32.totalorder %s644_s0, %s644_s0 }
  0x26   :  { %p651_p4 = por %p650_p3, %p649_p2 }
  0x28   :  { %p652_p5 = pnand %p651_p4, %p645_p1 }
  0x2a   :  { %655 = shalt.err (!%p652_p5)
}
  0x2b   :  { %67 = dma.hbm_to_vmem [thread:$0]  %s775_s5, 2048, %s62_s16, [#allocation9], %s686_s29, %s686_s29, %s687_s30  }
  0x2c   :  { %676 = dma.done.wait [#allocation3], 256  }
  0x2d   :  { %677 = vsyncadd [#allocation3], 4294967040 }
  0x2e   :  { %678 = dma.done.wait [#allocation6], 4096  }
  0x2f   :  { %679 = vsyncadd [#allocation6], 4294963200 }
  0x30   :  { %680 = dma.done.wait [#allocation9], 2048  }
  0x31   :  { %681 = vsyncadd [#allocation9], 4294965248  ;;  %v99_v0 = vld [vmem:[#allocation5 + $0x78] sm:$0xff]  ;;  %v98_v1 = vld [vmem:[#allocation5 + $0x70] sm:$0xff]  ;;  %s690_s24 = smov [#allocation10]  }
  0x32   :  { %464 = vmatprep.subr.mxu0 %v99_v0  ;;  %v97_v2 = vld [vmem:[#allocation5 + $0x68] sm:$0xff]  ;;  %v96_v3 = vld [vmem:[#allocation5 + $0x60] sm:$0xff]  ;;  %v82_v4 = vld [vmem:[#allocation2] sm:$0xff]  ;;  %s393_s25 = sshll.u32 %s690_s24, 4  ;;  %s394_s25 = int_to_ptr.vmem [resolvable:$true] %s393_s25 }
  0x33   :  { %465 = vmatpush3.msra.mxu0 %v99_v0  ;;  %v95_v5 = vld [vmem:[#allocation5 + $0x58] sm:$0xff]  ;;  %496 = vmatprep.mubr.f32.mxu0 %v82_v4  ;;  %v200_v7 = vld [vmem:[#allocation7 + $0x70] sm:$0xff]  ;;  %v199_v9 = vld [vmem:[#allocation7 + $0x68] sm:$0xff]  ;;  %p661_p7 = scmp.lt.s32.totalorder %s394_s25, %s394_s25 }
  0x34   :  { %466 = vmatprep.subr.mxu0 %v98_v1  ;;  %v201_v6 = vld [vmem:[#allocation7 + $0x78] sm:$0xff]  ;;  %v94_v8 = vld [vmem:[#allocation5 + $0x50] sm:$0xff]  ;;  %v93_v10 = vld [vmem:[#allocation5 + $0x48] sm:$0xff] }
  0x35   :  { %467 = vmatpush3.msra.mxu0 %v98_v1  ;;  %499 = vmatprep.subr.mxu1 %v201_v6  ;;  %v198_v11 = vld [vmem:[#allocation7 + $0x60] sm:$0xff]  ;;  %v197_v13 = vld [vmem:[#allocation7 + $0x58] sm:$0xff]  ;;  %v196_v15 = vld [vmem:[#allocation7 + $0x50] sm:$0xff] }
  0x36   :  { %468 = vmatprep.subr.mxu0 %v97_v2  ;;  %500 = vmatpush3.msra.mxu1 %v201_v6  ;;  %v92_v12 = vld [vmem:[#allocation5 + $0x40] sm:$0xff]  ;;  %v91_v14 = vld [vmem:[#allocation5 + $0x38] sm:$0xff]  ;;  %v90_v16 = vld [vmem:[#allocation5 + $0x30] sm:$0xff] }
  0x37   :  { %469 = vmatpush3.msra.mxu0 %v97_v2  ;;  %501 = vmatprep.subr.mxu1 %v200_v7  ;;  %v195_v17 = vld [vmem:[#allocation7 + $0x48] sm:$0xff]  ;;  %v194_v19 = vld [vmem:[#allocation7 + $0x40] sm:$0xff]  ;;  %v193_v21 = vld [vmem:[#allocation7 + $0x38] sm:$0xff] }
  0x38   :  { %470 = vmatprep.subr.mxu0 %v96_v3  ;;  %502 = vmatpush3.msra.mxu1 %v200_v7  ;;  %v89_v18 = vld [vmem:[#allocation5 + $0x28] sm:$0xff]  ;;  %v88_v20 = vld [vmem:[#allocation5 + $0x20] sm:$0xff]  ;;  %v87_v22 = vld [vmem:[#allocation5 + $0x18] sm:$0xff] }
  0x39   :  { %471 = vmatpush3.msra.mxu0 %v96_v3  ;;  %503 = vmatprep.subr.mxu1 %v199_v9  ;;  %v192_v23 = vld [vmem:[#allocation7 + $0x30] sm:$0xff]  ;;  %v191_v25 = vld [vmem:[#allocation7 + $0x28] sm:$0xff]  ;;  %v84_v27 = vld [vmem:[#allocation5] sm:$0xff] }
  0x3a   :  { %472 = vmatprep.subr.mxu0 %v95_v5  ;;  %504 = vmatpush3.msra.mxu1 %v199_v9  ;;  %v86_v24 = vld [vmem:[#allocation5 + $0x10] sm:$0xff]  ;;  %v85_v26 = vld [vmem:[#allocation5 + $0x8] sm:$0xff]  ;;  %v83_v28 = vld [vmem:[#allocation2 + $0x8] sm:$0xff] }
  0x3b   :  { %473 = vmatpush3.msra.mxu0 %v95_v5  ;;  %505 = vmatprep.subr.mxu1 %v198_v11  ;;  %v190_v29 = vld [vmem:[#allocation7 + $0x20] sm:$0xff]  ;;  %v189_v30 = vld [vmem:[#allocation7 + $0x18] sm:$0xff]  ;;  %v188_v31 = vld [vmem:[#allocation7 + $0x10] sm:$0xff] }
  0x3c   :  { %474 = vmatprep.subr.mxu0 %v94_v8  ;;  %506 = vmatpush3.msra.mxu1 %v198_v11  ;;  %v187_v32 = vld [vmem:[#allocation7 + $0x8] sm:$0xff]  ;;  %v186_v33 = vld [vmem:[#allocation7] sm:$0xff]  ;;  %v303_v34 = vld [vmem:[#allocation8 + $0x78] sm:$0xff] }
  0x3d   :  { %475 = vmatpush3.msra.mxu0 %v94_v8  ;;  %507 = vmatprep.subr.mxu1 %v197_v13  ;;  %v302_v35 = vld [vmem:[#allocation8 + $0x70] sm:$0xff]  ;;  %v301_v36 = vld [vmem:[#allocation8 + $0x68] sm:$0xff]  ;;  %v300_v37 = vld [vmem:[#allocation8 + $0x60] sm:$0xff] }
  0x3e   :  { %476 = vmatprep.subr.mxu0 %v93_v10  ;;  %508 = vmatpush3.msra.mxu1 %v197_v13  ;;  %v299_v38 = vld [vmem:[#allocation8 + $0x58] sm:$0xff]  ;;  %v298_v39 = vld [vmem:[#allocation8 + $0x50] sm:$0xff]  ;;  %v297_v40 = vld [vmem:[#allocation8 + $0x48] sm:$0xff] }
  0x3f   :  { %477 = vmatpush3.msra.mxu0 %v93_v10  ;;  %509 = vmatprep.subr.mxu1 %v196_v15  ;;  %v296_v41 = vld [vmem:[#allocation8 + $0x40] sm:$0xff]  ;;  %v295_v42 = vld [vmem:[#allocation8 + $0x38] sm:$0xff]  ;;  %v294_v43 = vld [vmem:[#allocation8 + $0x30] sm:$0xff] }
  0x40   :  { %478 = vmatprep.subr.mxu0 %v92_v12  ;;  %510 = vmatpush3.msra.mxu1 %v196_v15  ;;  %v293_v44 = vld [vmem:[#allocation8 + $0x28] sm:$0xff]  ;;  %v407_v45 = vld [vmem:[%s772_s2] ss:$0 sm:$0xff]  ;;  %v292_v54 = vld [vmem:[#allocation8 + $0x20] sm:$0xff] }
  0x41   :  { %479 = vmatpush3.msra.mxu0 %v92_v12  ;;  %511 = vmatprep.subr.mxu1 %v195_v17  ;;  %v291_v55 = vld [vmem:[#allocation8 + $0x18] sm:$0xff]  ;;  %v290_v56 = vld [vmem:[#allocation8 + $0x10] sm:$0xff]  ;;  %v289_v57 = vld [vmem:[#allocation8 + $0x8] sm:$0xff] }
  0x42   :  { %480 = vmatprep.subr.mxu0 %v91_v14  ;;  %512 = vmatpush3.msra.mxu1 %v195_v17  ;;  %v288_v58 = vld [vmem:[#allocation8] sm:$0xff]  ;;  %v408_v59 = vld [vmem:[%s774_s4] ss:$0 sm:$0xff]  ;;  %s656_s4 = scalar_lea.vmem %s394_s25, 256 }
  0x43   :  { %481 = vmatpush3.msra.mxu0 %v91_v14  ;;  %513 = vmatprep.subr.mxu1 %v194_v19  ;;  %v409_v4 = vld [vmem:[%s776_s6] ss:$0 sm:$0xff]  ;;  %p657_p6 = scmp.ne.s32.totalorder %s394_s25, %s656_s4  ;;  %p662_p8 = scmp.lt.s32.totalorder %s656_s4, %s656_s4 }
  0x44   :  { %482 = vmatprep.subr.mxu0 %v90_v16  ;;  %514 = vmatpush3.msra.mxu1 %v194_v19 }
  0x45   :  { %483 = vmatpush3.msra.mxu0 %v90_v16  ;;  %515 = vmatprep.subr.mxu1 %v193_v21  ;;  %p663_p9 = por %p662_p8, %p661_p7 }
  0x46   :  { %484 = vmatprep.subr.mxu0 %v89_v18  ;;  %516 = vmatpush3.msra.mxu1 %v193_v21 }
  0x47   :  { %485 = vmatpush3.msra.mxu0 %v89_v18  ;;  %517 = vmatprep.subr.mxu1 %v192_v23  ;;  %p664_p10 = pnand %p663_p9, %p657_p6 }
  0x48   :  { %486 = vmatprep.subr.mxu0 %v88_v20  ;;  %518 = vmatpush3.msra.mxu1 %v192_v23 }
  0x49   :  { %487 = vmatpush3.msra.mxu0 %v88_v20  ;;  %519 = vmatprep.subr.mxu1 %v191_v25 }
  0x4a   :  { %488 = vmatprep.subr.mxu0 %v87_v22  ;;  %520 = vmatpush3.msra.mxu1 %v191_v25 }
  0x4b   :  { %489 = vmatpush3.msra.mxu0 %v87_v22  ;;  %521 = vmatprep.subr.mxu1 %v190_v29 }
  0x4c   :  { %490 = vmatprep.subr.mxu0 %v86_v24  ;;  %522 = vmatpush3.msra.mxu1 %v190_v29 }
  0x4d   :  { %491 = vmatpush3.msra.mxu0 %v86_v24  ;;  %523 = vmatprep.subr.mxu1 %v189_v30 }
  0x4e   :  { %492 = vmatprep.subr.mxu0 %v85_v26  ;;  %524 = vmatpush3.msra.mxu1 %v189_v30 }
  0x4f   :  { %493 = vmatpush3.msra.mxu0 %v85_v26  ;;  %525 = vmatprep.subr.mxu1 %v188_v31 }
  0x50   :  { %494 = vmatprep.subr.mxu0 %v84_v27  ;;  %526 = vmatpush3.msra.mxu1 %v188_v31 }
  0x51   :  { %495 = vmatpush3.msra.mxu0 %v84_v27  ;;  %527 = vmatprep.subr.mxu1 %v187_v32 }
  0x52   :  { %497 = vmatmul.mubr.f32.vlgmr.msra.gmra.mxu0 %v83_v28  ;;  %528 = vmatpush3.msra.mxu1 %v187_v32 }
  0x53   :  { %529 = vmatprep.subr.mxu1 %v186_v33  ;;  %534 = vmatprep.subr.mxu0 %v303_v34 }
  0x54   :  { %530 = vmatpush3.msra.mxu1 %v186_v33  ;;  %535 = vmatpush3.msra.mxu0 %v303_v34 }
  0x55   :  { %536 = vmatprep.subr.mxu0 %v302_v35 }
  0x56   :  { %537 = vmatpush3.msra.mxu0 %v302_v35 }
  0x57   :  { %538 = vmatprep.subr.mxu0 %v301_v36 }
  0x58   :  { %539 = vmatpush3.msra.mxu0 %v301_v36 }
  0x59   :  { %540 = vmatprep.subr.mxu0 %v300_v37 }
  0x5a   :  { %541 = vmatpush3.msra.mxu0 %v300_v37 }
  0x5b   :  { %542 = vmatprep.subr.mxu0 %v299_v38 }
  0x5c   :  { %543 = vmatpush3.msra.mxu0 %v299_v38 }
  0x5d   :  { %544 = vmatprep.subr.mxu0 %v298_v39 }
  0x5e   :  { %545 = vmatpush3.msra.mxu0 %v298_v39 }
  0x5f   :  { %546 = vmatprep.subr.mxu0 %v297_v40 }
  0x60   :  { %547 = vmatpush3.msra.mxu0 %v297_v40 }
  0x61   :  { %548 = vmatprep.subr.mxu0 %v296_v41 }
  0x62   :  { %549 = vmatpush3.msra.mxu0 %v296_v41 }
  0x63   :  { %550 = vmatprep.subr.mxu0 %v295_v42 }
  0x64   :  { %551 = vmatpush3.msra.mxu0 %v295_v42 }
  0x65   :  { %552 = vmatprep.subr.mxu0 %v294_v43 }
  0x66   :  { %553 = vmatpush3.msra.mxu0 %v294_v43 }
  0x67   :  { %554 = vmatprep.subr.mxu0 %v293_v44 }
  0x68   :  { %555 = vmatpush3.msra.mxu0 %v293_v44 }
  0x69   :  { %556 = vmatprep.subr.mxu0 %v292_v54 }
  0x6a   :  { %557 = vmatpush3.msra.mxu0 %v292_v54 }
  0x6b   :  { %558 = vmatprep.subr.mxu0 %v291_v55 }
  0x6c   :  { %559 = vmatpush3.msra.mxu0 %v291_v55 }
  0x6d   :  { %560 = vmatprep.subr.mxu0 %v290_v56 }
  0x6e   :  { %561 = vmatpush3.msra.mxu0 %v290_v56 }
  0x6f   :  { %562 = vmatprep.subr.mxu0 %v289_v57 }
  0x70   :  { %563 = vmatpush3.msra.mxu0 %v289_v57 }
  0x71   :  { %564 = vmatprep.subr.mxu0 %v288_v58 }
  0x72   :  { %565 = vmatpush3.msra.mxu0 %v288_v58 }
 0x112   :  { %v498_v46 = vpop.f32.mrf.mxu0 }
 0x113   :  { %v179_v47 = vadd.f32 %v498_v46, %v407_v45 }
 0x114   :  { %v173_v48 = vpop.f32.mrf.mxu0 }
 0x115   :  { %v174_v49 = vadd.f32 %v407_v45, %v173_v48  ;;  %v183_v50 = vmul.f32 0.2, %v179_v47 }
 0x117   :  { %v182_v51 = vmul.f32 0.2, %v174_v49  ;;  %v185_v53 = vmax.f32 %v179_v47, %v183_v50 }
 0x119   :  { %v184_v52 = vmax.f32 %v174_v49, %v182_v51 }
 0x11b   :  { %531 = vmatprep.mubr.f32.mxu1 %v184_v52 }
 0x11c   :  { %532 = vmatmul.mubr.f32.vlgmr.msra.gmra.mxu1 %v185_v53 }
 0x1dc   :  { %v533_v60 = vpop.f32.mrf.mxu1 }
 0x1dd   :  { %v281_v61 = vadd.f32 %v533_v60, %v408_v59 }
 0x1de   :  { %v275_v62 = vpop.f32.mrf.mxu1 }
 0x1df   :  { %v276_v63 = vadd.f32 %v408_v59, %v275_v62  ;;  %v285_v0 = vmul.f32 0.2, %v281_v61 }
 0x1e1   :  { %v284_v1 = vmul.f32 0.2, %v276_v63  ;;  %v287_v3 = vmax.f32 %v281_v61, %v285_v0 }
 0x1e3   :  { %v286_v2 = vmax.f32 %v276_v63, %v284_v1 }
 0x1e5   :  { %566 = vmatprep.mubr.f32.mxu0 %v286_v2 }
 0x1e6   :  { %567 = vmatmul.mubr.f32.vlgmr.msra.gmra.mxu0 %v287_v3 }
 0x2a6   :  { %v568_v5 = vpop.f32.mrf.mxu0 }
 0x2a7   :  { %v383_v6 = vadd.f32 %v568_v5, %v409_v4 }
 0x2a8   :  { %v377_v7 = vpop.f32.mrf.mxu0 }
 0x2a9   :  { %387 = vst [vmem:[#allocation10 + $0x8] sm:$0xff] %v383_v6  ;;  %v378_v8 = vadd.f32 %v409_v4, %v377_v7 }
 0x2ab   :  { %386 = vst [vmem:[#allocation10] sm:$0xff] %v378_v8 }
 0x2ac   :  { %667 = shalt.err (!%p664_p10)
}
 0x2ad   :  { %399 = dma.vmem_to_hbm [thread:$0]  %s394_s25, 256, %s777_s7, [#allocation4], %s686_s29, %s686_s29, %s687_s30  }
 0x2ae   :  { %682 = dma.done.wait [#allocation4], 256  }
 0x2af   :  { %683 = vsyncadd [#allocation4], 4294967040 }
 0x2b0   :  { %403 = vsyncpa [#allocation3], 1 }
 0x2b1   :  { %404 = vsyncpa [#allocation6], 1 }
 0x2b2   :  { %405 = vsyncpa [#allocation9], 1 }
 0x2b3   :  { %406 = vsyncpa [#allocation4], 1 }

</bundles_post_ra>
